<compile_context>
chip_gen: v7x
topology: tpu7x:2x2x1
jax: 0.10.0
libtpu: 0.0.40
codegen_flags: <defaults>
</compile_context>

<pallas_src>
import functools

import jax
import jax.numpy as jnp
from jax import lax
from jax.experimental import pallas as pl
from jax.experimental.pallas import tpu as pltpu

NUM_CLASSES = 35
_LANE = 128
# 32 MiB scoped VMEM is safe on v5e/v6e (128 MiB physical) and v7x (64 MiB).
_VMEM_LIMIT_BYTES = 32 * 1024 * 1024
# Data-window budget used to size tile_p (leaves headroom under the limit).
_TILE_BUDGET_BYTES = 20 * 1024 * 1024


def _round_up(n, m):
    return ((n + m - 1) // m) * m


def _segexp_kernel(x_ref, y_ref, out_ref, *, b, c, p, tile_p,
                   tiles_per_split, num_classes, need_mask):
    """Per (split, spatial-tile) body.

    x_ref  : (b*c, tile_p) f32   channels flattened into rows
    y_ref  : (b,   tile_p) i32
    out_ref: (1, 3, num_classes) f32 per-split partial (resident across the
             tile axis); rows = [C.Sx, C.Sx2, C.Snz].
    """
    s = pl.program_id(0)
    t = pl.program_id(1)

    @pl.when(t == 0)
    def _init():
        out_ref[...] = jnp.zeros_like(out_ref)

    x = x_ref[...]                                      # (b*c, TP)
    y = y_ref[...]                                      # (b,   TP)

    valid = None
    if need_mask:
        # Lane-validity mask for the ragged last tile / phantom tiles: the
        # out-of-range lanes of a boundary block hold unspecified data, so
        # they must be zeroed (via select) before any reduction.
        lane = lax.broadcasted_iota(jnp.int32, (1, tile_p), 1)
        start = (s * tiles_per_split + t) * tile_p
        valid = (start + lane) < p                      # (1, TP)

    # Loop-invariant per-pixel sums over the batch, one pass over the
    # per-batch channel means (pure lane-dense VPU work).
    inv_c = jnp.float32(1.0 / c)
    sx = sx2 = snz = None
    for j in range(b):                                  # static, small batch
        xm_j = jnp.sum(x[j * c:(j + 1) * c, :], axis=0, keepdims=True) * inv_c
        if need_mask:
            xm_j = jnp.where(valid, xm_j, 0.0)
        nz_j = (xm_j != 0.0).astype(jnp.float32)
        if sx is None:
            sx, sx2, snz = xm_j, xm_j * xm_j, nz_j
        else:
            sx = sx + xm_j
            sx2 = sx2 + xm_j * xm_j
            snz = snz + nz_j
    s_mat = jnp.concatenate([sx, sx2, snz], axis=0)     # (3, TP)

    # Per-pixel class histogram C[i, p] = sum_k [y[k, p] == i]. Invalid lanes
    # need no extra masking here: integer garbage compares to finite 0/1 and
    # s_mat is already exactly 0 on those lanes.
    cls = lax.broadcasted_iota(jnp.int32, (num_classes, tile_p), 0)
    c_mat = None
    for k in range(b):                                  # static, small batch
        eq = (y[k:k + 1, :] == cls).astype(jnp.float32)
        c_mat = eq if c_mat is None else c_mat + eq

    # All 35 classes x 3 statistics in one MXU matmul (lane-dim contraction).
    partial = lax.dot_general(s_mat, c_mat, (((1,), (1,)), ((), ())),
                              preferred_element_type=jnp.float32)   # (3, NC)
    out_ref[...] += partial[None]


def l_segexp(x, y, *, tile_p=None):
    """Pallas implementation of L_segexp.forward(x, y). Returns an f32 scalar."""
    b, c, h, w = x.shape
    p = h * w

    # Lane-dense 2-D layouts (contiguous reshapes, no copies in HBM).
    x2 = x.reshape(b * c, p).astype(jnp.float32)
    y2 = y.reshape(b, p).astype(jnp.int32)

    # ---- choose the spatial (lane) tile from a VMEM budget -----------------
    if tile_p is None:
        # f32 words live per lane: double-buffered x/y blocks, per-batch mean
        # temps, histogram + iota + compare temps, margin.
        words_per_lane = 2 * b * c + 2 * b + 4 * b + 4 * NUM_CLASSES + 8
        tile_p = (_TILE_BUDGET_BYTES // (4 * words_per_lane)) // _LANE * _LANE
        tile_p = max(tile_p, _LANE)
    else:
        tile_p = max(_round_up(tile_p, _LANE), _LANE)

    if tile_p >= p:
        # Whole image in a single block (block dims == full array dims, so
        # the lane dim need not be a multiple of 128). No mask, no split.
        tile_p = p
        num_tiles, num_splits, tps, need_mask = 1, 1, 1, False
    else:
        num_tiles = pl.cdiv(p, tile_p)
        # Split the spatial reduction into 2 chunks; with "parallel" on the
        # leading grid axis this shards onto both TensorCores on v7x and is
        # simply sequential (neutral) on single-core v5e/v6e.
        num_splits = 2
        tps = pl.cdiv(num_tiles, num_splits)
        need_mask = (num_splits * tps * tile_p != p)

    last_block = num_tiles - 1

    def data_map(s, t):
        # Clamp phantom tiles (when num_splits*tps > num_tiles) onto the last
        # real block; their lanes are fully masked off in-kernel.
        return (0, jnp.minimum(s * tps + t, last_block))

    kernel = functools.partial(
        _segexp_kernel, b=b, c=c, p=p, tile_p=tile_p, tiles_per_split=tps,
        num_classes=NUM_CLASSES, need_mask=need_mask)

    partials = pl.pallas_call(
        kernel,
        out_shape=jax.ShapeDtypeStruct((num_splits, 3, NUM_CLASSES),
                                       jnp.float32),
        grid_spec=pltpu.PrefetchScalarGridSpec(
            num_scalar_prefetch=0,
            grid=(num_splits, tps),
            in_specs=[
                pl.BlockSpec((b * c, tile_p), data_map),
                pl.BlockSpec((b, tile_p), data_map),
            ],
            out_specs=pl.BlockSpec((1, 3, NUM_CLASSES),
                                   lambda s, t: (s, 0, 0)),
        ),
        compiler_params=pltpu.CompilerParams(
            dimension_semantics=("parallel", "arbitrary"),
            vmem_limit_bytes=_VMEM_LIMIT_BYTES),
    )(x2, y2)

    # Tiny finalize in plain JAX so per-split partials can be combined.
    tot = jnp.sum(partials, axis=0)                     # (3, NC)
    inv_total = jnp.float32(1.0 / (b * b * h * w))
    s_a, s_q, s_n = tot[0], tot[1], tot[2]
    d2 = s_a * inv_total
    d3 = (s_q - 2.0 * d2 * s_a + d2 * d2 * s_n) * inv_total
    return jnp.sum(d3)


def l_segexp_ref(x, y):
    """Pure-JAX reference mirroring the PyTorch code line-by-line."""
    b, c, h, w = x.shape
    xm = jnp.mean(x.astype(jnp.float32), axis=1, keepdims=True)   # (b,1,h,w)
    a1 = jnp.zeros((b, h, w), jnp.float32)
    d = jnp.float32(0.0)
    for i in range(NUM_CLASSES):
        a2 = jnp.where(y == i, xm, a1)               # broadcasts to (b,b,h,w)
        d2 = jnp.mean(a2)
        a2 = jnp.where(a2 == 0.0, d2, a2)
        d3 = jnp.mean((a2 - d2) ** 2)
        d = d + d3
    return d


if __name__ == "__main__":
    key = jax.random.PRNGKey(0)
    kx, ky = jax.random.split(key)
    b, c, h, w = 2, 4, 16, 16
    x = jax.random.uniform(kx, (b, c, h, w), dtype=jnp.float32)
    y = jax.random.randint(ky, (b, h, w), 0, NUM_CLASSES, dtype=jnp.int32)

    out = jax.block_until_ready(l_segexp(x, y))
    ref = l_segexp_ref(x, y)
    assert jnp.allclose(out, ref, atol=1e-4, rtol=1e-4), (out, ref)

    # Multi-tile + 2-way split path (exercises init/accumulate/combine).
    out_mt = jax.block_until_ready(l_segexp(x, y, tile_p=128))
    assert jnp.allclose(out_mt, ref, atol=1e-4, rtol=1e-4), (out_mt, ref)

    # Non-128-multiple spatial size: single-tile (no mask) and tiled (mask).
    kx2, ky2 = jax.random.split(ky)
    b2, c2, h2, w2 = 2, 3, 10, 20
    x_odd = jax.random.uniform(kx2, (b2, c2, h2, w2), dtype=jnp.float32)
    y_odd = jax.random.randint(ky2, (b2, h2, w2), 0, NUM_CLASSES,
                               dtype=jnp.int32)
    ref_odd = l_segexp_ref(x_odd, y_odd)
    out_odd = jax.block_until_ready(l_segexp(x_odd, y_odd))
    assert jnp.allclose(out_odd, ref_odd, atol=1e-4, rtol=1e-4), (out_odd, ref_odd)
    out_odd_t = jax.block_until_ready(l_segexp(x_odd, y_odd, tile_p=128))
    assert jnp.allclose(out_odd_t, ref_odd, atol=1e-4, rtol=1e-4), (out_odd_t, ref_odd)

    # Odd tile count (3 tiles over 2 splits -> exercises the phantom-tile
    # clamp + full-mask path).
    kx3, ky3 = jax.random.split(ky2)
    b3, c3, h3, w3 = 2, 4, 16, 20
    x3 = jax.random.uniform(kx3, (b3, c3, h3, w3), dtype=jnp.float32)
    y3 = jax.random.randint(ky3, (b3, h3, w3), 0, NUM_CLASSES, dtype=jnp.int32)
    out3 = jax.block_until_ready(l_segexp(x3, y3, tile_p=128))
    ref3 = l_segexp_ref(x3, y3)
    assert jnp.allclose(out3, ref3, atol=1e-4, rtol=1e-4), (out3, ref3)

    print("KERNEL_OK")
</pallas_src>

<mosaic_0001>
module attributes {stable_mosaic.version = 11 : i64} {
  func.func @_segexp_kernel(%arg0: i32, %arg1: i32, %arg2: memref<8x256xf32, #tpu.memory_space<vmem>>, %arg3: memref<2x256xi32, #tpu.memory_space<vmem>>, %arg4: memref<1x3x35xf32, #tpu.memory_space<vmem>>) attributes {dimension_semantics = [#tpu.dimension_semantics<parallel>, #tpu.dimension_semantics<arbitrary>], iteration_bounds = array<i64: 1, 1>, scalar_prefetch = 0 : i64, scratch_operands = 0 : i64, tpu.core_type = #tpu.core_type<tc>, window_params = [{transform_indices = @transform_0, window_bounds = array<i64: 8, 256>}, {transform_indices = @transform_1, window_bounds = array<i64: 2, 256>}, {transform_indices = @transform_2, window_bounds = array<i64: 1, 3, 35>}]} {
    %c0_i32 = arith.constant 0 : i32
    %0 = arith.cmpi eq, %arg1, %c0_i32 : i32
    %1 = arith.extui %0 : i1 to i32
    %c0_i32_0 = arith.constant 0 : i32
    %2 = arith.cmpi ne, %1, %c0_i32_0 : i32
    scf.if %2 {
      %cst_16 = arith.constant 0.000000e+00 : f32
      %46 = vector.broadcast %cst_16 : f32 to vector<1x3x35xf32>
      %c0_17 = arith.constant 0 : index
      %c0_18 = arith.constant 0 : index
      %c0_19 = arith.constant 0 : index
      %47 = vector.load %arg4[%c0_17, %c0_18, %c0_19] : memref<1x3x35xf32, #tpu.memory_space<vmem>>, vector<1x3x35xf32>
      tpu.vector_store %arg4[%c0_17, %c0_18, %c0_19], %46 {strides = array<i32>} : memref<1x3x35xf32, #tpu.memory_space<vmem>>, vector<1x3x35xf32>,
    } else {
    }
    %c0 = arith.constant 0 : index
    %c0_1 = arith.constant 0 : index
    %3 = vector.load %arg2[%c0, %c0_1] : memref<8x256xf32, #tpu.memory_space<vmem>>, vector<8x256xf32>
    %c0_2 = arith.constant 0 : index
    %c0_3 = arith.constant 0 : index
    %4 = vector.load %arg3[%c0_2, %c0_3] : memref<2x256xi32, #tpu.memory_space<vmem>>, vector<2x256xi32>
    %5 = vector.extract_strided_slice %3 {offsets = [0, 0], sizes = [4, 256], strides = [1, 1]} : vector<8x256xf32> to vector<4x256xf32>
    %cst = arith.constant dense<0.000000e+00> : vector<256xf32>
    %6 = vector.multi_reduction <add>, %5, %cst [0] : vector<4x256xf32> to vector<256xf32>
    %7 = vector.shape_cast %6 : vector<256xf32> to vector<1x256xf32>
    %cst_4 = arith.constant 2.500000e-01 : f32
    %8 = vector.broadcast %cst_4 : f32 to vector<1x256xf32>
    %9 = arith.mulf %7, %8 : vector<1x256xf32>
    %cst_5 = arith.constant 0.000000e+00 : f32
    %10 = vector.broadcast %cst_5 : f32 to vector<1x256xf32>
    %11 = arith.cmpf one, %9, %10 : vector<1x256xf32>
    %12 = arith.extui %11 : vector<1x256xi1> to vector<1x256xi32>
    %13 = arith.sitofp %12 : vector<1x256xi32> to vector<1x256xf32>
    %14 = arith.mulf %9, %9 : vector<1x256xf32>
    %15 = vector.extract_strided_slice %3 {offsets = [4, 0], sizes = [4, 256], strides = [1, 1]} : vector<8x256xf32> to vector<4x256xf32>
    %cst_6 = arith.constant dense<0.000000e+00> : vector<256xf32>
    %16 = vector.multi_reduction <add>, %15, %cst_6 [0] : vector<4x256xf32> to vector<256xf32>
    %17 = vector.shape_cast %16 : vector<256xf32> to vector<1x256xf32>
    %cst_7 = arith.constant 2.500000e-01 : f32
    %18 = vector.broadcast %cst_7 : f32 to vector<1x256xf32>
    %19 = arith.mulf %17, %18 : vector<1x256xf32>
    %cst_8 = arith.constant 0.000000e+00 : f32
    %20 = vector.broadcast %cst_8 : f32 to vector<1x256xf32>
    %21 = arith.cmpf one, %19, %20 : vector<1x256xf32>
    %22 = arith.extui %21 : vector<1x256xi1> to vector<1x256xi32>
    %23 = arith.sitofp %22 : vector<1x256xi32> to vector<1x256xf32>
    %24 = arith.addf %9, %19 : vector<1x256xf32>
    %25 = arith.mulf %19, %19 : vector<1x256xf32>
    %26 = arith.addf %14, %25 : vector<1x256xf32>
    %27 = arith.addf %13, %23 : vector<1x256xf32>
    %28 = tpu.concatenate %24, %26, %27 in 0 : vector<1x256xf32>, vector<1x256xf32>, vector<1x256xf32> -> vector<3x256xf32>
    %29 = tpu.iota {dimensions = array<i32: 0>} : vector<35x256xi32>
    %30 = vector.extract_strided_slice %4 {offsets = [0, 0], sizes = [1, 256], strides = [1, 1]} : vector<2x256xi32> to vector<1x256xi32>
    %31 = vector.broadcast %30 : vector<1x256xi32> to vector<35x256xi32>
    %32 = arith.cmpi eq, %31, %29 : vector<35x256xi32>
    %33 = arith.extui %32 : vector<35x256xi1> to vector<35x256xi32>
    %34 = arith.sitofp %33 : vector<35x256xi32> to vector<35x256xf32>
    %35 = vector.extract_strided_slice %4 {offsets = [1, 0], sizes = [1, 256], strides = [1, 1]} : vector<2x256xi32> to vector<1x256xi32>
    %36 = vector.broadcast %35 : vector<1x256xi32> to vector<35x256xi32>
    %37 = arith.cmpi eq, %36, %29 : vector<35x256xi32>
    %38 = arith.extui %37 : vector<35x256xi1> to vector<35x256xi32>
    %39 = arith.sitofp %38 : vector<35x256xi32> to vector<35x256xf32>
    %40 = arith.addf %34, %39 : vector<35x256xf32>
    %cst_9 = arith.constant dense<0.000000e+00> : vector<3x35xf32>
    %41 = tpu.matmul %28, %40, %cst_9 {dimension_numbers = #tpu.dot_dimension_numbers<[1], [1], [0], [0], [0, 0, 1, 0], [], []>} : vector<3x256xf32>, vector<35x256xf32>, vector<3x35xf32> -> vector<3x35xf32>
    %c0_10 = arith.constant 0 : index
    %c0_11 = arith.constant 0 : index
    %c0_12 = arith.constant 0 : index
    %42 = vector.load %arg4[%c0_10, %c0_11, %c0_12] : memref<1x3x35xf32, #tpu.memory_space<vmem>>, vector<1x3x35xf32>
    %43 = vector.shape_cast %41 : vector<3x35xf32> to vector<1x3x35xf32>
    %44 = arith.addf %42, %43 : vector<1x3x35xf32>
    %c0_13 = arith.constant 0 : index
    %c0_14 = arith.constant 0 : index
    %c0_15 = arith.constant 0 : index
    %45 = vector.load %arg4[%c0_13, %c0_14, %c0_15] : memref<1x3x35xf32, #tpu.memory_space<vmem>>, vector<1x3x35xf32>
    tpu.vector_store %arg4[%c0_13, %c0_14, %c0_15], %44 {strides = array<i32>} : memref<1x3x35xf32, #tpu.memory_space<vmem>>, vector<1x3x35xf32>,
    return
  }
  func.func @transform_0(%arg0: i32, %arg1: i32) -> (i32, i32) {
    %c1_i32 = arith.constant 1 : i32
    %0 = arith.muli %arg0, %c1_i32 : i32
    %1 = arith.addi %0, %arg1 : i32
    %c0_i32 = arith.constant 0 : i32
    %2 = arith.minsi %1, %c0_i32 : i32
    %c0_i32_0 = arith.constant 0 : i32
    %c0_i32_1 = arith.constant 0 : i32
    return %c0_i32_0, %2 : i32, i32
  }
  func.func @transform_1(%arg0: i32, %arg1: i32) -> (i32, i32) {
    %c1_i32 = arith.constant 1 : i32
    %0 = arith.muli %arg0, %c1_i32 : i32
    %1 = arith.addi %0, %arg1 : i32
    %c0_i32 = arith.constant 0 : i32
    %2 = arith.minsi %1, %c0_i32 : i32
    %c0_i32_0 = arith.constant 0 : i32
    %c0_i32_1 = arith.constant 0 : i32
    return %c0_i32_0, %2 : i32, i32
  }
  func.func @transform_2(%arg0: i32, %arg1: i32) -> (i32, i32, i32) {
    %c0_i32 = arith.constant 0 : i32
    %c0_i32_0 = arith.constant 0 : i32
    %c0_i32_1 = arith.constant 0 : i32
    return %arg0, %c0_i32, %c0_i32_0 : i32, i32, i32
  }
}

</mosaic_0001>

<bundles_post_ra>
// kernel: tpu_custom_call.1
= control target key start
LH: loop header
LB: loop body
LE: loop exit
PB: predicated region body
PF: predicated region fallthrough
CT: control target
= control target key end

     0   :  { %7 = vsyncpa [#allocation3], 0  ;;  %s530_s0 = inlined_call_operand.hbm [shape: f32[8,256], index: 0, kind: input, shape index: {}]   ;;  %s531_s1 = inlined_call_operand.hbm [shape: s32[2,256], index: 1, kind: input, shape index: {}]   ;;  %s532_s2 = inlined_call_operand.vmem [shape: f32[1,3,35], index: 2, kind: output, shape index: {}]  }
   0x1   :  { %8 = vsyncpa [#allocation5], 0  ;;  %s406_s9 = smov [#allocation2]   ;;  %s407_s11 = smov [#allocation4]  }
   0x2   :  { %s21_s10 = sshll.u32 %s406_s9, 4  ;;  %s37_s12 = sshll.u32 %s407_s11, 4  ;;  %s22_s10 = int_to_ptr.vmem [resolvable:$true] %s21_s10  ;;  %s38_s12 = int_to_ptr.vmem [resolvable:$true] %s37_s12 }
   0x3   :  { %s358_s15 = scalar_lea.hbm %s530_s0, 256 }
   0x4   :  { %p359_p0 = scmp.ne.s32.totalorder %s530_s0, %s358_s15  ;;  %p362_p1 = scmp.lt.u32.totalorder %s358_s15, %s530_s0 }
   0x6   :  { %p364_p2 = pnand %p362_p1, %p359_p0 }
   0x8   :  { %367 = shalt.err (!%p364_p2)
}
   0x9   :  { %s368_s20 = scalar_lea.vmem %s22_s10, 256  ;;  %p373_p4 = scmp.lt.s32.totalorder %s22_s10, %s22_s10 }
   0xa   :  { %p369_p3 = scmp.ne.s32.totalorder %s22_s10, %s368_s20  ;;  %p374_p5 = scmp.lt.s32.totalorder %s368_s20, %s368_s20 }
   0xc   :  { %p375_p6 = por %p374_p5, %p373_p4 }
   0xe   :  { %p376_p7 = pnand %p375_p6, %p369_p3 }
  0x10   :  { %379 = shalt.err (!%p376_p7)
}
  0x11   :  { %24 = dma.hbm_to_vmem [thread:$0]  %s530_s0, 256, %s22_s10, [#allocation3]  }
  0x12   :  { %s380_s25 = scalar_lea.hbm %s531_s1, 64 }
  0x13   :  { %p381_p8 = scmp.ne.s32.totalorder %s531_s1, %s380_s25  ;;  %p384_p9 = scmp.lt.u32.totalorder %s380_s25, %s531_s1 }
  0x15   :  { %p386_p10 = pnand %p384_p9, %p381_p8 }
  0x17   :  { %389 = shalt.err (!%p386_p10)
}
  0x18   :  { %s390_s30 = scalar_lea.vmem %s38_s12, 64  ;;  %p395_p12 = scmp.lt.s32.totalorder %s38_s12, %s38_s12 }
  0x19   :  { %p391_p11 = scmp.ne.s32.totalorder %s38_s12, %s390_s30  ;;  %p396_p13 = scmp.lt.s32.totalorder %s390_s30, %s390_s30 }
  0x1b   :  { %p397_p0 = por %p396_p13, %p395_p12 }
  0x1d   :  { %p398_p1 = pnand %p397_p0, %p391_p11 }
  0x1f   :  { %401 = shalt.err (!%p398_p1)
}
  0x20   :  { %40 = dma.hbm_to_vmem [thread:$0]  %s531_s1, 64, %s38_s12, [#allocation5]  }
  0x21   :  { %402 = dma.done.wait [#allocation3], 256  }
  0x22   :  { %403 = vsyncadd [#allocation3], 4294967040 }
  0x23   :  { %404 = dma.done.wait [#allocation5], 64  }
  0x24   :  { %405 = vsyncadd [#allocation5], 4294967232  ;;  %vm59_vm0 = vcmask 280576   ;;  %v131_v0 = vlaneseq  ;;  %v408_v1 = vmov 0.0   ;;  %vm64_vm1 = vcmask 1043456   ;;  %v62_v11 = vld [vmem:[#allocation2 + $0x8] sm:$0xff] }
  0x25   :  { %60 = vst.msk [vmem:[%s532_s2] sm:$0x7] %vm59_vm0, %v408_v1  ;;  %v63_v8 = vld [vmem:[#allocation4] sm:$0xf]  ;;  %v457_v12 = vld [vmem:[#allocation2] sm:$0xff]  ;;  %v72_v18 = vsel %vm64_vm1, %v62_v11, 0.0 }
  0x26   :  { %v132_v2 = vshrl.u32 %v131_v0, 7  ;;  %v92_v19 = vrot.slane %v62_v11, 4  ;;  %v464_v20 = vsel %vm64_vm1, %v457_v12, 0.0  ;;  %v91_v24 = vrot.slane %v457_v12, 4 }
  0x27   :  { %v73_v26 = vrot.slane %v72_v18, 4  ;;  %v66_v28 = vrot.slane %v464_v20, 4 }
  0x28   :  { %v139_v3 = vsub.s32 0, %v132_v2  ;;  %v143_v4 = vsub.s32 2, %v132_v2  ;;  %v185_v5 = vsub.s32 1, %v132_v2  ;;  %v189_v6 = vsub.s32 3, %v132_v2 }
  0x29   :  { %v133_v7 = vadd.s32 8, %v132_v2  ;;  %v453_v9 = vadd.s32 16, %v132_v2  ;;  %v455_v10 = vadd.s32 24, %v132_v2  ;;  %v459_v17 = vadd.s32 32, %v132_v2 }
  0x2a   :  { %v144_v13 = vrot.slane %v63_v8, %v143_v4  ;;  %v190_v14 = vrot.slane %v63_v8, %v189_v6  ;;  %v140_v15 = vrot.slane %v63_v8, %v139_v3  ;;  %v186_v16 = vrot.slane %v63_v8, %v185_v5 }
  0x2b   :  { %v102_v27 = vsel %vm64_vm1, %v92_v19, 0.0  ;;  %v95_v54 = vsel %vm64_vm1, %v91_v24, 0.0  ;;  %v74_v59 = vadd.f32 %v73_v26, %v72_v18  ;;  %v67_v62 = vadd.f32 %v66_v28, %v464_v20 }
  0x2c   :  { %v152_v21 = vrot.slane %v144_v13, %v139_v3  ;;  %v198_v22 = vrot.slane %v190_v14, %v185_v5  ;;  %v466_v23 = vrot.slane %v140_v15, %v139_v3  ;;  %v469_v25 = vrot.slane %v186_v16, %v185_v5 }
  0x2d   :  { %v103_v61 = vrot.slane %v102_v27, 4  ;;  %v75_v0 = vrot.slane %v74_v59, 2  ;;  %v68_v4 = vrot.slane %v67_v62, 2 }
  0x2e   :  { %vm154_vm2 = vcmp.eq.s32.totalorder %v152_v21, %v132_v2  ;;  %vm156_vm3 = vcmp.eq.s32.totalorder %v152_v21, %v133_v7  ;;  %vm200_vm4 = vcmp.eq.s32.totalorder %v198_v22, %v132_v2  ;;  %vm202_vm5 = vcmp.eq.s32.totalorder %v198_v22, %v133_v7 }
  0x2f   :  { %v328_v29 = vsel %vm154_vm2, 1.0, %v408_v1  ;;  %v330_v30 = vsel %vm156_vm3, 1.0, %v408_v1  ;;  %v338_v31 = vsel %vm200_vm4, 1.0, %v408_v1  ;;  %v340_v32 = vsel %vm202_vm5, 1.0, %v408_v1 }
  0x30   :  { %v230_v33 = vadd.f32 %v338_v31, %v328_v29  ;;  %v232_v34 = vadd.f32 %v340_v32, %v330_v30  ;;  %vm153_vm6 = vcmp.eq.s32.totalorder %v466_v23, %v132_v2  ;;  %vm155_vm7 = vcmp.eq.s32.totalorder %v466_v23, %v133_v7 }
  0x31   :  { %v327_v35 = vsel %vm153_vm6, 1.0, %v408_v1  ;;  %v329_v36 = vsel %vm155_vm7, 1.0, %v408_v1  ;;  %vm199_vm8 = vcmp.eq.s32.totalorder %v469_v25, %v132_v2  ;;  %vm201_vm9 = vcmp.eq.s32.totalorder %v469_v25, %v133_v7 }
  0x32   :  { %v347_v37 = vpack.c.bf16 %v232_v34, %v230_v33  ;;  %v337_v38 = vsel %vm199_vm8, 1.0, %v408_v1  ;;  %v339_v39 = vsel %vm201_vm9, 1.0, %v408_v1  ;;  %vm158_vm10 = vcmp.eq.s32.totalorder %v152_v21, %v453_v9 }
  0x33   :  { %v229_v40 = vadd.f32 %v337_v38, %v327_v35  ;;  %v231_v41 = vadd.f32 %v339_v39, %v329_v36  ;;  %vm160_vm11 = vcmp.eq.s32.totalorder %v152_v21, %v455_v10  ;;  %v332_v42 = vsel %vm158_vm10, 1.0, %v408_v1 }
  0x34   :  { %348 = vmatprep.subr.bf16.mxu0 %v347_v37  ;;  %v334_v43 = vsel %vm160_vm11, 1.0, %v408_v1  ;;  %vm204_vm12 = vcmp.eq.s32.totalorder %v198_v22, %v453_v9  ;;  %vm206_vm13 = vcmp.eq.s32.totalorder %v198_v22, %v455_v10  ;;  %vm157_vm14 = vcmp.eq.s32.totalorder %v466_v23, %v453_v9 }
  0x35   :  { %v349_v44 = vpack.c.bf16 %v231_v41, %v229_v40  ;;  %v342_v45 = vsel %vm204_vm12, 1.0, %v408_v1  ;;  %v344_v46 = vsel %vm206_vm13, 1.0, %v408_v1  ;;  %vm159_vm15 = vcmp.eq.s32.totalorder %v466_v23, %v455_v10 }
  0x36   :  { %v234_v47 = vadd.f32 %v342_v45, %v332_v42  ;;  %v236_v48 = vadd.f32 %v344_v46, %v334_v43  ;;  %v331_v49 = vsel %vm157_vm14, 1.0, %v408_v1  ;;  %v333_v50 = vsel %vm159_vm15, 1.0, %v408_v1  ;;  %v309_v45 = vld [vmem:[%s532_s2] sm:$0x7] }
  0x37   :  { %350 = vmatpush1.bf16.xpose.msra.mxu0 %v349_v44  ;;  %vm203_vm2 = vcmp.eq.s32.totalorder %v469_v25, %v453_v9  ;;  %vm205_vm3 = vcmp.eq.s32.totalorder %v469_v25, %v455_v10  ;;  %vm162_vm4 = vcmp.eq.s32.totalorder %v152_v21, %v459_v17  ;;  %vm208_vm5 = vcmp.eq.s32.totalorder %v198_v22, %v459_v17 }
  0x38   :  { %v351_v51 = vpack.c.bf16 %v236_v48, %v234_v47  ;;  %v341_v52 = vsel %vm203_vm2, 1.0, %v408_v1  ;;  %v343_v53 = vsel %vm205_vm3, 1.0, %v408_v1  ;;  %v336_v57 = vsel %vm162_vm4, 1.0, %v408_v1 }
  0x39   :  { %v233_v55 = vadd.f32 %v341_v52, %v331_v49  ;;  %v235_v56 = vadd.f32 %v343_v53, %v333_v50  ;;  %v346_v58 = vsel %vm208_vm5, 1.0, %v408_v1  ;;  %v96_v2 = vrot.slane %v95_v54, 4 }
  0x3a   :  { %352 = vmatprep.subr.bf16.mxu0 %v351_v51  ;;  %v238_v63 = vadd.f32 %v346_v58, %v336_v57  ;;  %vm161_vm6 = vcmp.eq.s32.totalorder %v466_v23, %v459_v17  ;;  %vm207_vm1 = vcmp.eq.s32.totalorder %v469_v25, %v459_v17  ;;  %v104_v3 = vadd.f32 %v103_v61, %v102_v27 }
  0x3b   :  { %v353_v60 = vpack.c.bf16 %v235_v56, %v233_v55  ;;  %v76_v5 = vadd.f32 %v75_v0, %v74_v59  ;;  %v97_v6 = vadd.f32 %v96_v2, %v95_v54  ;;  %v69_v8 = vadd.f32 %v68_v4, %v67_v62 }
  0x3c   :  { %v105_v7 = vrot.slane %v104_v3, 2  ;;  %v335_v9 = vsel %vm161_vm6, 1.0, %v408_v1  ;;  %v345_v10 = vsel %vm207_vm1, 1.0, %v408_v1  ;;  %vm125_vm9 = vcmask 1040384  }
  0x3d   :  { %v77_v11 = vrot.slane %v76_v5, 1  ;;  %v98_v12 = vrot.slane %v97_v6, 2  ;;  %v70_v14 = vrot.slane %v69_v8, 1  ;;  %v237_v18 = vadd.f32 %v345_v10, %v335_v9 }
  0x3e   :  { %v106_v13 = vadd.f32 %v105_v7, %v104_v3  ;;  %vm128_vm12 = vcmask 1041408  }
  0x3f   :  { %354 = vmatpush1.bf16.xpose.msra.mxu0 %v353_v60  ;;  %v78_v15 = vadd.f32 %v77_v11, %v76_v5  ;;  %v99_v16 = vadd.f32 %v98_v12, %v97_v6  ;;  %v71_v19 = vadd.f32 %v70_v14, %v69_v8 }
  0x40   :  { %247 = vmatprep.subr.mxu0 %v238_v63  ;;  %v107_v17 = vrot.slane %v106_v13, 1 }
  0x41   :  { %v80_v20 = vmul.f32 0.25, %v78_v15  ;;  %v100_v21 = vrot.slane %v99_v16, 1  ;;  %v79_v23 = vmul.f32 0.25, %v71_v19 }
  0x42   :  { %v108_v22 = vadd.f32 %v107_v17, %v106_v13 }
  0x43   :  { %vm82_vm7 = vcmp.ne.f32.partialorder %v80_v20, 0.0  ;;  %v101_v24 = vadd.f32 %v100_v21, %v99_v16  ;;  %v88_v25 = vmul.f32 %v80_v20, %v80_v20  ;;  %vm81_vm8 = vcmp.ne.f32.partialorder %v79_v23, 0.0 }
  0x44   :  { %v110_v26 = vmul.f32 0.25, %v108_v22  ;;  %v324_v27 = vsel %vm82_vm7, 1.0, %v408_v1  ;;  %v87_v28 = vmul.f32 %v79_v23, %v79_v23  ;;  %v323_v32 = vsel %vm81_vm8, 1.0, %v408_v1 }
  0x45   :  { %v109_v29 = vmul.f32 0.25, %v101_v24 }
  0x46   :  { %vm112_vm10 = vcmp.ne.f32.partialorder %v110_v26, 0.0  ;;  %v118_v30 = vadd.f32 %v110_v26, %v80_v20  ;;  %v120_v31 = vmul.f32 %v110_v26, %v110_v26 }
  0x47   :  { %248 = vmatpush1.xpose.msra.mxu0 %v237_v18  ;;  %v326_v33 = vsel %vm112_vm10, 1.0, %v408_v1  ;;  %vm111_vm11 = vcmp.ne.f32.partialorder %v109_v29, 0.0  ;;  %v117_v34 = vadd.f32 %v109_v29, %v79_v23  ;;  %v119_v35 = vmul.f32 %v109_v29, %v109_v29 }
  0x48   :  { %v122_v36 = vadd.f32 %v120_v31, %v88_v25  ;;  %v124_v37 = vadd.f32 %v326_v33, %v324_v27  ;;  %v325_v38 = vsel %vm111_vm11, 1.0, %v408_v1 }
  0x49   :  { %v121_v39 = vadd.f32 %v119_v35, %v87_v28  ;;  %v123_v40 = vadd.f32 %v325_v38, %v323_v32 }
  0x4a   :  { %v127_v41 = vsel %vm125_vm9, %v118_v30, %v122_v36 }
  0x4b   :  { %v130_v42 = vsel %vm128_vm12, %v127_v41, %v124_v37  ;;  %v126_v43 = vsel %vm125_vm9, %v117_v34, %v121_v39 }
  0x4c   :  { %303 = vmatprep.mubr.f32.mxu0 %v130_v42  ;;  %v129_v44 = vsel %vm128_vm12, %v126_v43, %v123_v40 }
  0x4d   :  { %304 = vmatmul.mubr.f32.vlgmr.msra.gmra.mrb[0].mxu0 %v129_v44 }
 0x120   :  { %v305_v46 = vpop.f32.mrb[0].mxu0 }
 0x121   :  { %v310_v47 = vadd.f32 %v309_v45, %v305_v46  ;;  %v307_v48 = vpop.f32.mrb[1].mxu0 }
 0x123   :  { %312 = vst.msk [vmem:[%s532_s2] sm:$0x7] %vm59_vm0, %v310_v47 }
 0x124   :  { %317 = vsyncpa [#allocation3], 1 }
 0x125   :  { %318 = vsyncpa [#allocation5], 1 }

</bundles_post_ra>
